<compile_context>
chip_gen: v6e
topology: v6e:2x2x1
jax: 0.10.0
libtpu: 0.0.40
codegen_flags: <defaults>
</compile_context>

<pallas_src>
import functools

import jax
import jax.numpy as jnp
from jax.experimental import pallas as pl
from jax.experimental.pallas import tpu as pltpu


_LANE = 128
_TARGET_BLOCK_BYTES = 2 * 1024 * 1024       # ~2 MiB of payload per grid step
_VMEM_LIMIT_BYTES = 32 * 1024 * 1024        # explicit scoped-VMEM budget


def _round_up(x, m):
    return (x + m - 1) // m * m


def _check_block_fits(block_bytes):
    # Input + output blocks are each double-buffered by the pipeline.
    if 2 * block_bytes > _VMEM_LIMIT_BYTES:
        # TODO(synk): spatial (row-halo) tiling for very large feature maps.
        raise NotImplementedError(
            "ResizablePool Pallas kernel: per-step block of %d bytes exceeds "
            "the VMEM budget; spatial tiling is not implemented." % block_bytes)


def _make_pool_masks(H, W, HWp, dtype):
    """Additive halo masks for the separable 3x3/s1/p1 max pool.

    Four rows of length HWp: 0 where the rolled neighbour is valid, -inf where
    the roll would cross an image boundary (left / right / top / bottom).
    Built once in the wrapper so the kernel does no iota/mod/div work.
    """
    HW = H * W
    p = jnp.arange(HWp, dtype=jnp.int32)
    neg = jnp.asarray(-jnp.inf, dtype)
    zero = jnp.zeros((), dtype)
    m_left = jnp.where(p % W == 0, neg, zero)
    m_right = jnp.where(p % W == W - 1, neg, zero)
    m_up = jnp.where(p < W, neg, zero)
    m_down = jnp.where(p >= HW - W, neg, zero)
    return jnp.stack([m_left, m_right, m_up, m_down], axis=0)   # (4, HWp)


def _maxpool3x3_flat(x, W, masks):
    """3x3 / stride-1 / pad-1 max pool on flattened spatial lanes.

    x: (..., HWp); masks: (4, HWp) additive 0/-inf (same dtype as x).
    Shifts are lane rolls (XLU slot); boundaries handled by the masks.
    pltpu.roll follows jnp.roll semantics: out[i] = x[(i - shift) % HWp].
    """
    axis = x.ndim - 1
    HWp = x.shape[axis]
    mshape = (1,) * (x.ndim - 1) + (HWp,)
    m_left = masks[0:1, :].reshape(mshape)
    m_right = masks[1:2, :].reshape(mshape)
    m_up = masks[2:3, :].reshape(mshape)
    m_down = masks[3:4, :].reshape(mshape)

    # W direction: neighbours at +-1 along the lane axis.
    frm_left = pltpu.roll(x, shift=1, axis=axis) + m_left
    frm_right = pltpu.roll(x, shift=HWp - 1, axis=axis) + m_right
    wmax = jnp.maximum(jnp.maximum(x, frm_left), frm_right)

    # H direction: neighbours at +-W along the lane axis.
    frm_up = pltpu.roll(wmax, shift=W, axis=axis) + m_up
    frm_down = pltpu.roll(wmax, shift=HWp - W, axis=axis) + m_down
    return jnp.maximum(jnp.maximum(wmax, frm_up), frm_down)


# ---------------------------------------------------------------------------
# Kernels
# ---------------------------------------------------------------------------
def _pool_kernel(W, masks_ref, x_ref, o_ref):
    # x_ref/o_ref: (R, HWp) — R rows of flattened (image, channel) maps.
    o_ref[...] = _maxpool3x3_flat(x_ref[...], W, masks_ref[...])


def _pool_conv_bn_mxu_kernel(W, masks_ref, x_ref, w_ref, shift_ref, o_ref):
    # Large-channel path: x_ref (C_in, HWp), w_ref (C_out, C_in),
    # shift_ref (C_out, 1) f32, o_ref (C_out, HWp).  Lane-dense MXU matmul.
    pooled = _maxpool3x3_flat(x_ref[...], W, masks_ref[...])
    acc = jnp.dot(w_ref[...], pooled, preferred_element_type=jnp.float32)
    o_ref[...] = (acc + shift_ref[...]).astype(o_ref.dtype)


def _pool_conv_bn_vpu_kernel(W, masks_ref, x_ref, wT_ref, shift_ref, o_ref):
    # Tiny-channel path: 1x1 conv as C_out broadcast-multiply + sublane
    # reductions (VPU + XLU) over a block of TN images — no MXU round-trip.
    # x_ref: (TN, C_in, HWp), wT_ref: (C_in, C_out) f32, shift_ref: (C_out, 1)
    C_in = x_ref.shape[1]
    C_out = o_ref.shape[1]
    pooled = _maxpool3x3_flat(x_ref[...], W, masks_ref[...]).astype(jnp.float32)
    wt = wT_ref[...]                       # (C_in, C_out)
    sh = shift_ref[...]                    # (C_out, 1)
    for o in range(C_out):                                    # static unroll
        w_col = wt[:, o:o + 1].reshape(1, C_in, 1)            # (1, C_in, 1)
        acc = jnp.sum(pooled * w_col, axis=1, keepdims=True)  # (TN, 1, HWp)
        acc = acc + sh[o:o + 1, :].reshape(1, 1, 1)
        o_ref[:, o:o + 1, :] = acc.astype(o_ref.dtype)


# ---------------------------------------------------------------------------
# Wrappers
# ---------------------------------------------------------------------------
def maxpool3x3_s1_p1(x):
    """x: (N, C, H, W) -> (N, C, H, W); PyTorch MaxPool2d(3, 1, 1)."""
    N, C, H, W = x.shape
    HW = H * W
    HWp = _round_up(HW, _LANE)
    rows = N * C
    isz = x.dtype.itemsize

    xf = x.reshape(rows, HW)
    if HWp != HW:
        xf = jnp.pad(xf, ((0, 0), (0, HWp - HW)))
    masks = _make_pool_masks(H, W, HWp, x.dtype)

    # Row tile: as many (image, channel) rows per grid step as fit the target
    # block size — full sublane occupancy, few fat grid steps.
    max_rows = max(8, (_TARGET_BLOCK_BYTES // (HWp * isz)) // 8 * 8)
    R = rows if rows <= max_rows else max_rows
    _check_block_fits(2 * R * HWp * isz)          # in + out per step
    grid = (pl.cdiv(rows, R),)

    y = pl.pallas_call(
        functools.partial(_pool_kernel, W),
        out_shape=jax.ShapeDtypeStruct((rows, HWp), x.dtype),
        grid=grid,
        in_specs=[pl.BlockSpec((4, HWp), lambda i: (0, 0)),
                  pl.BlockSpec((R, HWp), lambda i: (i, 0))],
        out_specs=pl.BlockSpec((R, HWp), lambda i: (i, 0)),
        compiler_params=pltpu.CompilerParams(
            dimension_semantics=("parallel",),
            vmem_limit_bytes=_VMEM_LIMIT_BYTES),
    )(masks, xf)
    if HWp != HW:
        y = y[:, :HW]
    return y.reshape(N, C, H, W)


def pool_conv1x1_bn(x, conv_w, gamma, beta, running_mean, running_var,
                    eps=1e-3):
    """Fused MaxPool2d(3,1,1) -> Conv2d 1x1 (no bias) -> BatchNorm2d (eval)."""
    N, C_in, H, W = x.shape
    C_out = conv_w.shape[0]
    HW = H * W
    HWp = _round_up(HW, _LANE)
    isz = x.dtype.itemsize

    xf = x.reshape(N, C_in, HW)
    if HWp != HW:
        xf = jnp.pad(xf, ((0, 0), (0, 0), (0, HWp - HW)))
    masks = _make_pool_masks(H, W, HWp, x.dtype)

    # Eval-mode BN folded into the 1x1 conv weight + per-channel shift.
    scale = gamma / jnp.sqrt(running_var + eps)                      # (C_out,)
    w_folded = conv_w.reshape(C_out, C_in).astype(jnp.float32) * scale[:, None]
    shift = (beta - running_mean * scale).reshape(C_out, 1).astype(jnp.float32)

    use_mxu = (min(C_in, C_out) >= 32) or (C_in * C_out >= 2048)

    if use_mxu:
        # NAS-scale channels: per-image 2D MXU matmul; a single image already
        # moves hundreds of KiB per step at these channel counts.
        # NOTE: the folded BN scale is applied in x.dtype here (slightly less
        # exact than PyTorch's f32 BN when x is bf16).
        _check_block_fits((C_in + C_out) * HWp * isz)
        y = pl.pallas_call(
            functools.partial(_pool_conv_bn_mxu_kernel, W),
            out_shape=jax.ShapeDtypeStruct((N, C_out, HWp), x.dtype),
            grid=(N,),
            in_specs=[pl.BlockSpec((4, HWp), lambda n: (0, 0)),
                      pl.BlockSpec((None, C_in, HWp), lambda n: (n, 0, 0)),
                      pl.BlockSpec((C_out, C_in), lambda n: (0, 0)),
                      pl.BlockSpec((C_out, 1), lambda n: (0, 0))],
            out_specs=pl.BlockSpec((None, C_out, HWp), lambda n: (n, 0, 0)),
            compiler_params=pltpu.CompilerParams(
                dimension_semantics=("parallel",),
                vmem_limit_bytes=_VMEM_LIMIT_BYTES),
        )(masks, xf, w_folded.astype(x.dtype), shift)
    else:
        # Tiny channels: batch TN images per grid step, VPU/XLU conv in f32.
        per_img = (C_in + C_out) * HWp * isz
        TN = int(max(1, min(N, _TARGET_BLOCK_BYTES // max(per_img, 1))))
        _check_block_fits(TN * per_img)
        grid = (pl.cdiv(N, TN),)
        y = pl.pallas_call(
            functools.partial(_pool_conv_bn_vpu_kernel, W),
            out_shape=jax.ShapeDtypeStruct((N, C_out, HWp), x.dtype),
            grid=grid,
            in_specs=[pl.BlockSpec((4, HWp), lambda b: (0, 0)),
                      pl.BlockSpec((TN, C_in, HWp), lambda b: (b, 0, 0)),
                      pl.BlockSpec((C_in, C_out), lambda b: (0, 0)),
                      pl.BlockSpec((C_out, 1), lambda b: (0, 0))],
            out_specs=pl.BlockSpec((TN, C_out, HWp), lambda b: (b, 0, 0)),
            compiler_params=pltpu.CompilerParams(
                dimension_semantics=("parallel",),
                vmem_limit_bytes=_VMEM_LIMIT_BYTES),
        )(masks, xf, jnp.transpose(w_folded), shift)

    if HWp != HW:
        y = y[:, :, :HW]
    return y.reshape(N, C_out, H, W)


def resizable_pool_forward(x, params):
    """params is None when C_in == C_out, else a dict with conv/BN params."""
    if params is None:
        return maxpool3x3_s1_p1(x)
    return pool_conv1x1_bn(x, params["conv_w"], params["gamma"],
                           params["beta"], params["running_mean"],
                           params["running_var"])


# ---------------------------------------------------------------------------
# Pure-JAX reference (correctness check only)
# ---------------------------------------------------------------------------
def _ref_forward(x, params):
    xp = jnp.pad(x, ((0, 0), (0, 0), (1, 1), (1, 1)),
                 constant_values=-jnp.inf)
    p = jax.lax.reduce_window(xp, -jnp.inf, jax.lax.max,
                              (1, 1, 3, 3), (1, 1, 1, 1), "VALID")
    if params is None:
        return p
    eps = 1e-3
    w = params["conv_w"].reshape(params["conv_w"].shape[0], -1)   # (C_out, C_in)
    conv = jnp.einsum("oc,nchw->nohw", w, p,
                      precision=jax.lax.Precision.HIGHEST)
    scale = params["gamma"] / jnp.sqrt(params["running_var"] + eps)
    shift = params["beta"] - params["running_mean"] * scale
    return conv * scale[None, :, None, None] + shift[None, :, None, None]


def _make_params(key, C_in, C_out):
    k_w, k_g, k_b, k_m, k_v = jax.random.split(key, 5)
    return {
        "conv_w": jax.random.normal(k_w, (C_out, C_in, 1, 1), jnp.float32) * 0.1,
        "gamma": 1.0 + 0.1 * jax.random.normal(k_g, (C_out,), jnp.float32),
        "beta": 0.1 * jax.random.normal(k_b, (C_out,), jnp.float32),
        "running_mean": 0.1 * jax.random.normal(k_m, (C_out,), jnp.float32),
        "running_var": jnp.abs(jax.random.normal(k_v, (C_out,), jnp.float32)) + 0.5,
    }


if __name__ == "__main__":
    key = jax.random.PRNGKey(0)
    k_x1, k_p1, k_x2, k_p2 = jax.random.split(key, 4)

    # --- case 1: C_in == C_out -> pure MaxPool2d(3,1,1) ---------------------
    N, C_in, H, W = 2, 4, 16, 16
    x = jax.random.normal(k_x1, (N, C_in, H, W), dtype=jnp.float32)
    out1 = jax.block_until_ready(resizable_pool_forward(x, None))
    ref1 = _ref_forward(x, None)
    assert out1.shape == (N, C_in, H, W)
    assert jnp.allclose(out1, ref1, rtol=1e-5, atol=1e-5)

    # --- case 2: C_in != C_out, tiny channels (VPU conv path) ---------------
    C_out = 8
    params2 = _make_params(k_p1, C_in, C_out)
    out2 = jax.block_until_ready(resizable_pool_forward(x, params2))
    ref2 = _ref_forward(x, params2)
    assert out2.shape == (N, C_out, H, W)
    assert jnp.allclose(out2, ref2, rtol=1e-4, atol=1e-4)

    # --- case 3: larger channels (MXU conv path) + non-128-multiple H*W -----
    N3, C3_in, C3_out, H3, W3 = 2, 32, 64, 8, 8
    x3 = jax.random.normal(k_x2, (N3, C3_in, H3, W3), dtype=jnp.float32)
    params3 = _make_params(k_p2, C3_in, C3_out)
    out3 = jax.block_until_ready(resizable_pool_forward(x3, params3))
    ref3 = _ref_forward(x3, params3)
    assert out3.shape == (N3, C3_out, H3, W3)
    assert jnp.allclose(out3, ref3, rtol=1e-3, atol=1e-3)

    print("KERNEL_OK")
</pallas_src>

<mosaic_0001>
module attributes {stable_mosaic.version = 11 : i64} {
  func.func @_pool_kernel(%arg0: i32, %arg1: memref<4x256xf32, #tpu.memory_space<vmem>>, %arg2: memref<8x256xf32, #tpu.memory_space<vmem>>, %arg3: memref<8x256xf32, #tpu.memory_space<vmem>>) attributes {dimension_semantics = [#tpu.dimension_semantics<parallel>], iteration_bounds = array<i64: 1>, scalar_prefetch = 0 : i64, scratch_operands = 0 : i64, tpu.core_type = #tpu.core_type<tc>, window_params = [{pipeline_mode = #tpu.pipeline_mode<synchronous>, transform_indices = @transform_0, window_bounds = array<i64: 4, 256>}, {transform_indices = @transform_1, window_bounds = array<i64: 8, 256>}, {transform_indices = @transform_2, window_bounds = array<i64: 8, 256>}]} {
    %c0 = arith.constant 0 : index
    %c0_0 = arith.constant 0 : index
    %0 = vector.load %arg2[%c0, %c0_0] : memref<8x256xf32, #tpu.memory_space<vmem>>, vector<8x256xf32>
    %c0_1 = arith.constant 0 : index
    %c0_2 = arith.constant 0 : index
    %1 = vector.load %arg1[%c0_1, %c0_2] : memref<4x256xf32, #tpu.memory_space<vmem>>, vector<4x256xf32>
    %2 = vector.extract_strided_slice %1 {offsets = [0, 0], sizes = [1, 256], strides = [1, 1]} : vector<4x256xf32> to vector<1x256xf32>
    %3 = vector.extract_strided_slice %1 {offsets = [1, 0], sizes = [1, 256], strides = [1, 1]} : vector<4x256xf32> to vector<1x256xf32>
    %4 = vector.extract_strided_slice %1 {offsets = [2, 0], sizes = [1, 256], strides = [1, 1]} : vector<4x256xf32> to vector<1x256xf32>
    %5 = vector.extract_strided_slice %1 {offsets = [3, 0], sizes = [1, 256], strides = [1, 1]} : vector<4x256xf32> to vector<1x256xf32>
    %c1_i32 = arith.constant 1 : i32
    %6 = tpu.dynamic_rotate %0 by %c1_i32 dim 1 : vector<8x256xf32>, i32 -> vector<8x256xf32>
    %7 = vector.broadcast %2 : vector<1x256xf32> to vector<8x256xf32>
    %8 = arith.addf %6, %7 : vector<8x256xf32>
    %c255_i32 = arith.constant 255 : i32
    %9 = tpu.dynamic_rotate %0 by %c255_i32 dim 1 : vector<8x256xf32>, i32 -> vector<8x256xf32>
    %10 = vector.broadcast %3 : vector<1x256xf32> to vector<8x256xf32>
    %11 = arith.addf %9, %10 : vector<8x256xf32>
    %12 = arith.maximumf %0, %8 : vector<8x256xf32>
    %13 = arith.maximumf %12, %11 : vector<8x256xf32>
    %c16_i32 = arith.constant 16 : i32
    %14 = tpu.dynamic_rotate %13 by %c16_i32 dim 1 : vector<8x256xf32>, i32 -> vector<8x256xf32>
    %15 = vector.broadcast %4 : vector<1x256xf32> to vector<8x256xf32>
    %16 = arith.addf %14, %15 : vector<8x256xf32>
    %c240_i32 = arith.constant 240 : i32
    %17 = tpu.dynamic_rotate %13 by %c240_i32 dim 1 : vector<8x256xf32>, i32 -> vector<8x256xf32>
    %18 = vector.broadcast %5 : vector<1x256xf32> to vector<8x256xf32>
    %19 = arith.addf %17, %18 : vector<8x256xf32>
    %20 = arith.maximumf %13, %16 : vector<8x256xf32>
    %21 = arith.maximumf %20, %19 : vector<8x256xf32>
    %c0_3 = arith.constant 0 : index
    %c0_4 = arith.constant 0 : index
    %22 = vector.load %arg3[%c0_3, %c0_4] : memref<8x256xf32, #tpu.memory_space<vmem>>, vector<8x256xf32>
    tpu.vector_store %arg3[%c0_3, %c0_4], %21 {strides = array<i32>} : memref<8x256xf32, #tpu.memory_space<vmem>>, vector<8x256xf32>,
    return
  }
  func.func @transform_0(%arg0: i32) -> (i32, i32) {
    %c0_i32 = arith.constant 0 : i32
    %c0_i32_0 = arith.constant 0 : i32
    %c0_i32_1 = arith.constant 0 : i32
    return %c0_i32, %c0_i32_0 : i32, i32
  }
  func.func @transform_1(%arg0: i32) -> (i32, i32) {
    %c0_i32 = arith.constant 0 : i32
    %c0_i32_0 = arith.constant 0 : i32
    return %arg0, %c0_i32 : i32, i32
  }
  func.func @transform_2(%arg0: i32) -> (i32, i32) {
    %c0_i32 = arith.constant 0 : i32
    %c0_i32_0 = arith.constant 0 : i32
    return %arg0, %c0_i32 : i32, i32
  }
}

</mosaic_0001>

<bundles_post_ra>
// kernel: tpu_custom_call.1
= control target key start
LH: loop header
LB: loop body
LE: loop exit
PB: predicated region body
PF: predicated region fallthrough
CT: control target
= control target key end

     0   :  { %7 = vsyncpa [#allocation3], 0  ;;  %s280_s0 = inlined_call_operand.hbm [shape: f32[4,256], index: 0, kind: input, shape index: {}]   ;;  %s281_s1 = inlined_call_operand.hbm [shape: f32[8,256], index: 1, kind: input, shape index: {}]   ;;  %s282_s2 = inlined_call_operand.hbm [shape: f32[8,256], index: 2, kind: output, shape index: {}]  }
   0x1   :  { %8 = vsyncpa [#allocation6], 0 }
   0x2   :  { %9 = vsyncpa [#allocation4], 0  ;;  %s249_s9 = smov [#allocation2]   ;;  %s250_s11 = smov [#allocation5]  }
   0x3   :  { %s16_s10 = sshll.u32 %s249_s9, 4  ;;  %s26_s12 = sshll.u32 %s250_s11, 4  ;;  %s17_s10 = int_to_ptr.vmem [resolvable:$true] %s16_s10  ;;  %s27_s12 = int_to_ptr.vmem [resolvable:$true] %s26_s12 }
   0x4   :  { %s191_s13 = scalar_lea.vmem %s17_s10, 128  ;;  %p196_p1 = scmp.lt.s32.totalorder %s17_s10, %s17_s10 }
   0x5   :  { %p192_p0 = scmp.ne.s32.totalorder %s17_s10, %s191_s13  ;;  %p197_p2 = scmp.lt.s32.totalorder %s191_s13, %s191_s13 }
   0x7   :  { %p198_p3 = por %p197_p2, %p196_p1 }
   0x9   :  { %p199_p4 = pnand %p198_p3, %p192_p0 }
   0xb   :  { %202 = shalt.err (!%p199_p4)
}
   0xc   :  { %19 = dma.hbm_to_vmem [thread:$0]  %s280_s0, 128, %s17_s10, [#allocation3]  }
   0xd   :  { %s211_s16 = scalar_lea.vmem %s27_s12, 256  ;;  %p216_p6 = scmp.lt.s32.totalorder %s27_s12, %s27_s12 }
   0xe   :  { %p212_p5 = scmp.ne.s32.totalorder %s27_s12, %s211_s16  ;;  %p217_p7 = scmp.lt.s32.totalorder %s211_s16, %s211_s16 }
  0x10   :  { %p218_p8 = por %p217_p7, %p216_p6 }
  0x12   :  { %p219_p9 = pnand %p218_p8, %p212_p5 }
  0x14   :  { %222 = shalt.err (!%p219_p9)
}
  0x15   :  { %29 = dma.hbm_to_vmem [thread:$0]  %s281_s1, 256, %s27_s12, [#allocation6]  }
  0x16   :  { %243 = dma.done.wait [#allocation3], 128  }
  0x17   :  { %244 = vsyncadd [#allocation3], 4294967168 }
  0x18   :  { %245 = dma.done.wait [#allocation6], 256  }
  0x19   :  { %246 = vsyncadd [#allocation6], 4294967040  ;;  %v36_v0 = vld [vmem:[#allocation5] sm:$0xff]  ;;  %s251_s19 = smov 127   ;;  %s252_s20 = smov 1   ;;  %v37_v1 = vld [vmem:[#allocation5 + $0x8] sm:$0xff]  ;;  %v43_v2 = vlaneseq }
  0x1a   :  { %69 = vrot.lane.b32.xlu1 %v36_v0, %s251_s19  ;;  %39 = vrot.lane.b32.xlu0 %v36_v0, %s252_s20  ;;  %v38_v6 = vld [vmem:[#allocation2] sm:$0xff]  ;;  %s253_s0 = smov 16   ;;  %s254_s1 = smov 112  }
  0x1b   :  { %v50_v3 = vshrl.u32 %v43_v2, 7  ;;  %v44_v9 = vand.u32 127, %v43_v2  ;;  %s255_s21 = smov [#allocation7]  }
  0x1c   :  { %s166_s22 = sshll.u32 %s255_s21, 4  ;;  %s167_s22 = int_to_ptr.vmem [resolvable:$true] %s166_s22 }
  0x1d   :  { %v51_v4 = vsub.s32 0, %v50_v3  ;;  %v55_v5 = vsub.s32 4, %v50_v3  ;;  %v78_v7 = vsub.s32 1, %v50_v3  ;;  %v82_v8 = vsub.s32 5, %v50_v3  ;;  %s223_s23 = scalar_lea.vmem %s167_s22, 256  ;;  %p228_p11 = scmp.lt.s32.totalorder %s167_s22, %s167_s22 }
  0x1e   :  { %71 = vrot.lane.b32.xlu1 %v37_v1, %s251_s19  ;;  %41 = vrot.lane.b32.xlu0 %v37_v1, %s252_s20  ;;  %vm73_vm0 = vcmp.lt.s32.totalorder %v44_v9, 127  ;;  %vm45_vm1 = vcmp.lt.s32.totalorder %v44_v9, 1  ;;  %v109_v34 = vsub.s32 2, %v50_v3  ;;  %v113_v35 = vsub.s32 6, %v50_v3  ;;  %p224_p10 = scmp.ne.s32.totalorder %s167_s22, %s223_s23  ;;  %p229_p12 = scmp.lt.s32.totalorder %s223_s23, %s223_s23 }
  0x1f   :  { %v52_v10 = vrot.slane %v38_v6, %v51_v4  ;;  %v56_v11 = vrot.slane %v38_v6, %v55_v5  ;;  %v79_v14 = vrot.slane %v38_v6, %v78_v7  ;;  %v83_v15 = vrot.slane %v38_v6, %v82_v8 }
  0x20   :  { %v110_v36 = vrot.slane %v38_v6, %v109_v34  ;;  %v114_v37 = vrot.slane %v38_v6, %v113_v35  ;;  %v136_v38 = vsub.s32 3, %v50_v3  ;;  %v140_v39 = vsub.s32 7, %v50_v3  ;;  %p230_p13 = por %p229_p12, %p228_p11 }
  0x21   :  { %v62_v16 = vrot.slane %v52_v10, %v51_v4  ;;  %v66_v17 = vrot.slane %v56_v11, %v51_v4  ;;  %v89_v18 = vrot.slane %v79_v14, %v78_v7  ;;  %v93_v19 = vrot.slane %v83_v15, %v78_v7 }
  0x22   :  { %vm104_vm2 = vcmp.lt.s32.totalorder %v44_v9, 16  ;;  %v120_v40 = vrot.slane %v110_v36, %v109_v34  ;;  %v124_v41 = vrot.slane %v114_v37, %v109_v34  ;;  %v137_v42 = vrot.slane %v38_v6, %v136_v38  ;;  %p231_p0 = pnand %p230_p13, %p224_p10 }
  0x23   :  { %v141_v43 = vrot.slane %v38_v6, %v140_v39  ;;  %vm131_vm3 = vcmp.lt.s32.totalorder %v44_v9, 112 }
  0x24   :  { %v147_v50 = vrot.slane %v137_v42, %v136_v38 }
  0x25   :  { %v151_v51 = vrot.slane %v141_v43, %v136_v38 }
  0x8c   :  { %v70_v12 = vpop.permute.xlu1 %69  ;;  %v40_v13 = vpop.permute.xlu0 %39 }
  0x90   :  { %v72_v20 = vpop.permute.xlu1 %71  ;;  %v42_v21 = vpop.permute.xlu0 %41 }
  0x91   :  { %v74_v22 = vsel %vm73_vm0, %v70_v12, %v72_v20  ;;  %v75_v23 = vsel %vm73_vm0, %v72_v20, %v70_v12  ;;  %v46_v24 = vsel %vm45_vm1, %v40_v13, %v42_v21  ;;  %v47_v25 = vsel %vm45_vm1, %v42_v21, %v40_v13 }
  0x92   :  { %v67_v26 = vadd.f32 %v62_v16, %v47_v25  ;;  %v68_v27 = vadd.f32 %v66_v17, %v46_v24  ;;  %v94_v28 = vadd.f32 %v89_v18, %v74_v22  ;;  %v95_v29 = vadd.f32 %v93_v19, %v75_v23 }
  0x94   :  { %v96_v30 = vmax.f32 %v36_v0, %v67_v26  ;;  %v97_v31 = vmax.f32 %v37_v1, %v68_v27 }
  0x96   :  { %v98_v32 = vmax.f32 %v96_v30, %v94_v28  ;;  %v99_v33 = vmax.f32 %v97_v31, %v95_v29 }
  0x98   :  { %100 = vrot.lane.b32.xlu0 %v98_v32, %s253_s0  ;;  %102 = vrot.lane.b32.xlu1 %v99_v33, %s253_s0 }
  0x9c   :  { %127 = vrot.lane.b32.xlu0 %v98_v32, %s254_s1  ;;  %129 = vrot.lane.b32.xlu1 %v99_v33, %s254_s1 }
 0x10a   :  { %v101_v44 = vpop.permute.xlu0 %100  ;;  %v103_v45 = vpop.permute.xlu1 %102 }
 0x10b   :  { %v105_v46 = vsel %vm104_vm2, %v101_v44, %v103_v45  ;;  %v106_v47 = vsel %vm104_vm2, %v103_v45, %v101_v44 }
 0x10c   :  { %v125_v48 = vadd.f32 %v120_v40, %v106_v47  ;;  %v126_v49 = vadd.f32 %v124_v41, %v105_v46 }
 0x10e   :  { %v128_v52 = vpop.permute.xlu0 %127  ;;  %v130_v53 = vpop.permute.xlu1 %129  ;;  %v154_v56 = vmax.f32 %v98_v32, %v125_v48  ;;  %v155_v57 = vmax.f32 %v99_v33, %v126_v49 }
 0x10f   :  { %v132_v54 = vsel %vm131_vm3, %v128_v52, %v130_v53  ;;  %v133_v55 = vsel %vm131_vm3, %v130_v53, %v128_v52 }
 0x110   :  { %v152_v58 = vadd.f32 %v147_v50, %v132_v54  ;;  %v153_v59 = vadd.f32 %v151_v51, %v133_v55 }
 0x112   :  { %v156_v60 = vmax.f32 %v154_v56, %v152_v58  ;;  %v157_v61 = vmax.f32 %v155_v57, %v153_v59 }
 0x114   :  { %158 = vst [vmem:[#allocation7] sm:$0xff] %v156_v60  ;;  %159 = vst [vmem:[#allocation7 + $0x8] sm:$0xff] %v157_v61 }
 0x115   :  { %234 = shalt.err (!%p231_p0)
}
 0x116   :  { %169 = dma.vmem_to_hbm [thread:$0]  %s167_s22, 256, %s282_s2, [#allocation4]  }
 0x117   :  { %247 = dma.done.wait [#allocation4], 256  }
 0x118   :  { %248 = vsyncadd [#allocation4], 4294967040 }
 0x119   :  { %173 = vsyncpa [#allocation3], 1 }
 0x11a   :  { %174 = vsyncpa [#allocation6], 1 }
 0x11b   :  { %175 = vsyncpa [#allocation4], 1 }

</bundles_post_ra>
